<compile_context>
chip_gen: v7x
topology: tpu7x:2x2x1
jax: 0.10.0
libtpu: 0.0.40
codegen_flags: <defaults>
</compile_context>

<pallas_src>
import functools

import jax
import jax.numpy as jnp
from jax.experimental import pallas as pl
from jax.experimental.pallas import tpu as pltpu


def _il_loss_kernel(y_ref, feat_ref, centers_ref, out_ref, *, batch, lamb, lamb1):
    i = pl.program_id(0)

    @pl.when(i == 0)
    def _init():
        out_ref[...] = jnp.zeros_like(out_ref)

    centers = centers_ref[...]                       # (C, D) native dtype -> MXU operand
    labels = y_ref[...]                              # (TB, 1) int32
    tile_b = labels.shape[0]
    num_classes = centers.shape[0]

    # ---- center loss (this batch tile) -------------------------------------------------
    # Gather centers[y] as a one-hot matmul on the MXU; padded rows carry label == C,
    # which never matches the iota, so they produce an all-zero row and contribute 0.
    col = jax.lax.broadcasted_iota(jnp.int32, (tile_b, num_classes), 1)
    onehot = (col == labels).astype(centers.dtype)                        # (TB, C)
    centers_pred = jnp.dot(onehot, centers,
                           preferred_element_type=jnp.float32)            # (TB, D) f32
    diff = feat_ref[...].astype(jnp.float32) - centers_pred               # f32 elementwise
    out_ref[...] += jnp.sum(diff * diff)             # raw sum of squares, scaled at the end

    # ---- angular loss (depends only on centers; computed exactly once) -----------------
    @pl.when(i == pl.num_programs(0) - 1)
    def _finalize():
        c32 = centers.astype(jnp.float32)
        sq_norm = jnp.sum(c32 * c32, axis=1, keepdims=True)               # (C, 1)
        unit = c32 * jax.lax.rsqrt(sq_norm)                               # (C, D) rows / |row|
        s = jnp.sum(unit, axis=0, keepdims=True)                          # (1, D)
        # sum_{i,j} cos_ij == ||sum_i unit_i||^2 ; subtract the diagonal (~= C), then
        # add the "+1 per off-diagonal pair" term C*(C-1).
        sum_all_cos = jnp.sum(s * s, axis=1, keepdims=True)               # (1, 1)
        c = jnp.float32(num_classes)
        loss_ang = sum_all_cos - c + c * (c - 1.0)                        # (1, 1)
        loss_cen = 0.5 * out_ref[...] / jnp.float32(batch)                # (1, 1)
        out_ref[...] = jnp.float32(lamb) * (loss_cen + jnp.float32(lamb1) * loss_ang)


def _round_up(x, m):
    return (x + m - 1) // m * m


def il_loss(y, feat, centers, lamb=0.01, lamb1=10.0):
    """y: (B,) int labels; feat: (B, D) float; centers: (C, D) float -> scalar f32."""
    B, D = feat.shape
    C, Dc = centers.shape
    if D != Dc:
        raise ValueError(
            "Center's dim: {0} should be equal to input feature's dim: {1}".format(Dc, D))

    # Batch tile: biggest multiple-of-8 sublane tile up to 512 rows; keeps the (TB, D)
    # block VMEM-friendly (v7x has 64 MiB) while amortizing the ~0.35 us per-step overhead.
    TB = min(512, _round_up(B, 8))
    num_tiles = -(-B // TB)
    B_pad = num_tiles * TB

    y = y.astype(jnp.int32)
    if B_pad != B:
        # Pad features with zeros and labels with C (out-of-range sentinel) so padded
        # rows produce an all-zero one-hot row and contribute exactly 0 to the loss.
        feat = jnp.pad(feat, ((0, B_pad - B), (0, 0)))
        y = jnp.pad(y, (0, B_pad - B), constant_values=C)
    y2d = y.reshape(B_pad, 1)

    kernel = functools.partial(_il_loss_kernel, batch=B,
                               lamb=float(lamb), lamb1=float(lamb1))

    cost = pl.CostEstimate(
        flops=2 * B_pad * C * D + 4 * B_pad * D + 6 * C * D,
        transcendentals=C,  # one rsqrt per class row
        bytes_accessed=(feat.size * feat.dtype.itemsize
                        + centers.size * centers.dtype.itemsize
                        + y2d.size * 4 + 4),
    )

    out = pl.pallas_call(
        kernel,
        out_shape=jax.ShapeDtypeStruct((1, 1), jnp.float32),
        grid=(num_tiles,),
        in_specs=[
            pl.BlockSpec((TB, 1), lambda i: (i, 0)),   # labels (tiny int32, no one-hot DMA)
            pl.BlockSpec((TB, D), lambda i: (i, 0)),   # feat tile (pipelined over batch)
            pl.BlockSpec((C, D), lambda i: (0, 0)),    # centers (resident, constant block)
        ],
        out_specs=pl.BlockSpec((1, 1), lambda i: (0, 0)),  # resident scalar accumulator
        compiler_params=pltpu.CompilerParams(dimension_semantics=("arbitrary",)),
        cost_estimate=cost,
    )(y2d, feat, centers)
    return out[0, 0]


def il_loss_ref(y, feat, centers, lamb=0.01, lamb1=10.0):
    """Pure-JAX reference mirroring the PyTorch forward."""
    B = feat.shape[0]
    centers_pred = centers[y]
    diff = feat - centers_pred
    loss_cen = 0.5 * jnp.sum(diff ** 2) / B
    dist = jnp.linalg.norm(centers, axis=1)
    gram = centers @ centers.T
    cos = gram / (dist[:, None] * dist[None, :])
    C = centers.shape[0]
    mask = ~jnp.eye(C, dtype=bool)
    loss_ang = jnp.sum(jnp.where(mask, cos, 0.0)) + C * (C - 1)
    return lamb * (loss_cen + lamb1 * loss_ang)


if __name__ == "__main__":
    num_classes = 8
    feat_dim = 32
    batch = 8
    lamb, lamb1 = 0.01, 10.0

    key = jax.random.PRNGKey(0)
    k_c, k_f, k_y = jax.random.split(key, 3)

    # Deterministic synthetic "parameter" (torch.randn(num_classes, feat_dim) analogue).
    centers = jax.random.normal(k_c, (num_classes, feat_dim), dtype=jnp.float32)
    feat = jax.random.normal(k_f, (batch, feat_dim), dtype=jnp.float32)
    y = jax.random.randint(k_y, (batch,), 0, num_classes, dtype=jnp.int32)

    loss = jax.block_until_ready(il_loss(y, feat, centers, lamb=lamb, lamb1=lamb1))
    ref = jax.block_until_ready(il_loss_ref(y, feat, centers, lamb=lamb, lamb1=lamb1))
    assert jnp.allclose(loss, ref, rtol=1e-2, atol=1e-2), (loss, ref)

    print("KERNEL_OK")
</pallas_src>

<mosaic_0001>
module attributes {stable_mosaic.version = 11 : i64} {
  func.func @_il_loss_kernel(%arg0: i32, %arg1: memref<8x1xi32, #tpu.memory_space<vmem>>, %arg2: memref<8x32xf32, #tpu.memory_space<vmem>>, %arg3: memref<8x32xf32, #tpu.memory_space<vmem>>, %arg4: memref<1x1xf32, #tpu.memory_space<vmem>>) attributes {dimension_semantics = [#tpu.dimension_semantics<arbitrary>], iteration_bounds = array<i64: 1>, scalar_prefetch = 0 : i64, scratch_operands = 0 : i64, tpu.core_type = #tpu.core_type<tc>, window_params = [{transform_indices = @transform_0, window_bounds = array<i64: 8, 1>}, {transform_indices = @transform_1, window_bounds = array<i64: 8, 32>}, {pipeline_mode = #tpu.pipeline_mode<synchronous>, transform_indices = @transform_2, window_bounds = array<i64: 8, 32>}, {pipeline_mode = #tpu.pipeline_mode<synchronous>, transform_indices = @transform_3, window_bounds = array<i64: 1, 1>}]} {
    %c0_i32 = arith.constant 0 : i32
    %0 = arith.cmpi eq, %arg0, %c0_i32 : i32
    %1 = arith.extui %0 : i1 to i32
    %c0_i32_0 = arith.constant 0 : i32
    %2 = arith.cmpi ne, %1, %c0_i32_0 : i32
    scf.if %2 {
      %cst_13 = arith.constant 0.000000e+00 : f32
      %25 = vector.broadcast %cst_13 : f32 to vector<1x1xf32>
      %c0_14 = arith.constant 0 : index
      %c0_15 = arith.constant 0 : index
      %26 = vector.load %arg4[%c0_14, %c0_15] : memref<1x1xf32, #tpu.memory_space<vmem>>, vector<1x1xf32>
      tpu.vector_store %arg4[%c0_14, %c0_15], %25 {strides = array<i32>} : memref<1x1xf32, #tpu.memory_space<vmem>>, vector<1x1xf32>,
    } else {
    }
    %c0 = arith.constant 0 : index
    %c0_1 = arith.constant 0 : index
    %3 = vector.load %arg3[%c0, %c0_1] : memref<8x32xf32, #tpu.memory_space<vmem>>, vector<8x32xf32>
    %c0_2 = arith.constant 0 : index
    %c0_3 = arith.constant 0 : index
    %4 = vector.load %arg1[%c0_2, %c0_3] : memref<8x1xi32, #tpu.memory_space<vmem>>, vector<8x1xi32>
    %5 = tpu.iota {dimensions = array<i32: 1>} : vector<8x8xi32>
    %6 = vector.broadcast %4 : vector<8x1xi32> to vector<8x8xi32>
    %7 = arith.cmpi eq, %5, %6 : vector<8x8xi32>
    %8 = arith.extui %7 : vector<8x8xi1> to vector<8x8xi32>
    %9 = arith.sitofp %8 : vector<8x8xi32> to vector<8x8xf32>
    %cst = arith.constant dense<0.000000e+00> : vector<8x32xf32>
    %10 = tpu.matmul %9, %3, %cst {dimension_numbers = #tpu.dot_dimension_numbers<[1], [0], [0], [1], [0, 0, 1, 1], [], []>} : vector<8x8xf32>, vector<8x32xf32>, vector<8x32xf32> -> vector<8x32xf32>
    %c0_4 = arith.constant 0 : index
    %c0_5 = arith.constant 0 : index
    %11 = vector.load %arg2[%c0_4, %c0_5] : memref<8x32xf32, #tpu.memory_space<vmem>>, vector<8x32xf32>
    %12 = arith.subf %11, %10 : vector<8x32xf32>
    %c0_6 = arith.constant 0 : index
    %c0_7 = arith.constant 0 : index
    %13 = vector.load %arg4[%c0_6, %c0_7] : memref<1x1xf32, #tpu.memory_space<vmem>>, vector<1x1xf32>
    %14 = arith.mulf %12, %12 : vector<8x32xf32>
    %15 = vector.shape_cast %14 : vector<8x32xf32> to vector<1x8x32xf32>
    %cst_8 = arith.constant dense<0.000000e+00> : vector<1xf32>
    %16 = vector.multi_reduction <add>, %15, %cst_8 [1, 2] : vector<1x8x32xf32> to vector<1xf32>
    %17 = vector.shape_cast %16 : vector<1xf32> to vector<1x1x1xf32>
    %18 = vector.extract %17[0, 0, 0] : f32 from vector<1x1x1xf32>
    %19 = vector.broadcast %18 : f32 to vector<1x1xf32>
    %20 = arith.addf %13, %19 : vector<1x1xf32>
    %c0_9 = arith.constant 0 : index
    %c0_10 = arith.constant 0 : index
    %21 = vector.load %arg4[%c0_9, %c0_10] : memref<1x1xf32, #tpu.memory_space<vmem>>, vector<1x1xf32>
    tpu.vector_store %arg4[%c0_9, %c0_10], %20 {strides = array<i32>} : memref<1x1xf32, #tpu.memory_space<vmem>>, vector<1x1xf32>,
    %c0_i32_11 = arith.constant 0 : i32
    %22 = arith.cmpi eq, %arg0, %c0_i32_11 : i32
    %23 = arith.extui %22 : i1 to i32
    %c0_i32_12 = arith.constant 0 : i32
    %24 = arith.cmpi ne, %23, %c0_i32_12 : i32
    scf.if %24 {
      %25 = arith.mulf %3, %3 : vector<8x32xf32>
      %cst_13 = arith.constant dense<0.000000e+00> : vector<8xf32>
      %26 = vector.multi_reduction <add>, %25, %cst_13 [1] : vector<8x32xf32> to vector<8xf32>
      %27 = vector.shape_cast %26 : vector<8xf32> to vector<8x1xf32>
      %28 = math.rsqrt %27 : vector<8x1xf32>
      %29 = vector.broadcast %28 : vector<8x1xf32> to vector<8x32xf32>
      %30 = arith.mulf %3, %29 : vector<8x32xf32>
      %cst_14 = arith.constant dense<0.000000e+00> : vector<32xf32>
      %31 = vector.multi_reduction <add>, %30, %cst_14 [0] : vector<8x32xf32> to vector<32xf32>
      %32 = vector.shape_cast %31 : vector<32xf32> to vector<1x32xf32>
      %33 = arith.mulf %32, %32 : vector<1x32xf32>
      %cst_15 = arith.constant dense<0.000000e+00> : vector<1xf32>
      %34 = vector.multi_reduction <add>, %33, %cst_15 [1] : vector<1x32xf32> to vector<1xf32>
      %35 = vector.shape_cast %34 : vector<1xf32> to vector<1x1xf32>
      %cst_16 = arith.constant 8.000000e+00 : f32
      %36 = vector.broadcast %cst_16 : f32 to vector<1x1xf32>
      %37 = arith.subf %35, %36 : vector<1x1xf32>
      %cst_17 = arith.constant 8.000000e+00 : f32
      %cst_18 = arith.constant 1.000000e+00 : f32
      %38 = arith.subf %cst_17, %cst_18 : f32
      %cst_19 = arith.constant 8.000000e+00 : f32
      %39 = arith.mulf %cst_19, %38 : f32
      %40 = vector.broadcast %39 : f32 to vector<1x1xf32>
      %41 = arith.addf %37, %40 : vector<1x1xf32>
      %c0_20 = arith.constant 0 : index
      %c0_21 = arith.constant 0 : index
      %42 = vector.load %arg4[%c0_20, %c0_21] : memref<1x1xf32, #tpu.memory_space<vmem>>, vector<1x1xf32>
      %cst_22 = arith.constant 5.000000e-01 : f32
      %43 = vector.broadcast %cst_22 : f32 to vector<1x1xf32>
      %44 = arith.mulf %43, %42 : vector<1x1xf32>
      %cst_23 = arith.constant 8.000000e+00 : f32
      %45 = vector.broadcast %cst_23 : f32 to vector<1x1xf32>
      %46 = arith.divf %44, %45 : vector<1x1xf32>
      %cst_24 = arith.constant 1.000000e+01 : f32
      %47 = vector.broadcast %cst_24 : f32 to vector<1x1xf32>
      %48 = arith.mulf %47, %41 : vector<1x1xf32>
      %49 = arith.addf %46, %48 : vector<1x1xf32>
      %cst_25 = arith.constant 0.00999999977 : f32
      %50 = vector.broadcast %cst_25 : f32 to vector<1x1xf32>
      %51 = arith.mulf %50, %49 : vector<1x1xf32>
      %c0_26 = arith.constant 0 : index
      %c0_27 = arith.constant 0 : index
      %52 = vector.load %arg4[%c0_26, %c0_27] : memref<1x1xf32, #tpu.memory_space<vmem>>, vector<1x1xf32>
      tpu.vector_store %arg4[%c0_26, %c0_27], %51 {strides = array<i32>} : memref<1x1xf32, #tpu.memory_space<vmem>>, vector<1x1xf32>,
    } else {
    }
    return
  }
  func.func @transform_0(%arg0: i32) -> (i32, i32) {
    %c0_i32 = arith.constant 0 : i32
    %c0_i32_0 = arith.constant 0 : i32
    return %arg0, %c0_i32 : i32, i32
  }
  func.func @transform_1(%arg0: i32) -> (i32, i32) {
    %c0_i32 = arith.constant 0 : i32
    %c0_i32_0 = arith.constant 0 : i32
    return %arg0, %c0_i32 : i32, i32
  }
  func.func @transform_2(%arg0: i32) -> (i32, i32) {
    %c0_i32 = arith.constant 0 : i32
    %c0_i32_0 = arith.constant 0 : i32
    %c0_i32_1 = arith.constant 0 : i32
    return %c0_i32, %c0_i32_0 : i32, i32
  }
  func.func @transform_3(%arg0: i32) -> (i32, i32) {
    %c0_i32 = arith.constant 0 : i32
    %c0_i32_0 = arith.constant 0 : i32
    %c0_i32_1 = arith.constant 0 : i32
    return %c0_i32, %c0_i32_0 : i32, i32
  }
}

</mosaic_0001>

<bundles_post_ra>
// kernel: tpu_custom_call.1
= control target key start
LH: loop header
LB: loop body
LE: loop exit
PB: predicated region body
PF: predicated region fallthrough
CT: control target
= control target key end

     0   :  { %s263_s0 = inlined_call_operand.vmem [shape: s32[8,1], index: 0, kind: input, shape index: {}]   ;;  %s264_s1 = inlined_call_operand.vmem [shape: f32[8,32], index: 1, kind: input, shape index: {}]   ;;  %s265_s2 = inlined_call_operand.vmem [shape: f32[8,32], index: 2, kind: input, shape index: {}]   ;;  %s266_s3 = inlined_call_operand.hbm [shape: f32[1,1], index: 3, kind: output, shape index: {}]  }
   0x1   :  { %v22_v0 = vld [vmem:[%s263_s0] sm:$0xff] }
   0x2   :  { %8 = vsyncpa [#allocation3], 0  ;;  %v211_v1 = vmov 0   ;;  %v212_v2 = vmov 0.0   ;;  %v21_v3 = vld [vmem:[%s265_s2] sm:$0xff]  ;;  %vm213_vm0 = vmmov 0   ;;  %v23_v6 = vlaneseq }
   0x3   :  { %184 = vset.pattern.permute.xlu0 %v211_v1  ;;  %173 = vmatprep.subr.mxu0 %v212_v2  ;;  %v127_v4 = vmul.f32 %v21_v3, %v21_v3  ;;  %vm109_vm1 = vcmask 261120   ;;  %vm31_vm2 = vcmask 64512   ;;  %v105_v19 = vld [vmem:[%s264_s1] sm:$0xff]  ;;  %vm19_vm4 = vcmask 0   ;;  %s214_s16 = smov [#allocation2]  }
   0x4   :  { %26 = vperm.xlu0 %184, %v22_v0   ;;  %174 = vmatpush3.msra.mxu0 %v21_v3  ;;  %v24_v7 = vand.u32 127, %v23_v6  ;;  %20 = vst.msk [vmem:[#allocation2] sm:$0x1] %vm19_vm4, %v212_v2  ;;  %s160_s17 = sshll.u32 %s214_s16, 4  ;;  %s161_s17 = int_to_ptr.vmem [resolvable:$true] %s160_s17 }
   0x5   :  { %175 = vmatprep.mubr.msk.f32.mxu0 %vm213_vm0, %v212_v2  ;;  %v128_v5 = vsel %vm109_vm1, %v127_v4, 0.0  ;;  %s187_s18 = scalar_lea.vmem %s161_s17, 16  ;;  %s191_s19 = scalar_lea.vmem %s161_s17, 32 }
   0x6   :  { %p188_p0 = scmp.ne.s32.totalorder %s161_s17, %s187_s18  ;;  %p192_p1 = scmp.lt.s32.totalorder %s161_s17, %s161_s17 }
   0x7   :  { %p193_p2 = scmp.lt.s32.totalorder %s191_s19, %s187_s18 }
   0x9   :  { %p194_p3 = por %p193_p2, %p192_p1 }
   0xb   :  { %v107_v35 = vld [vmem:[#allocation2] sm:$0x1]  ;;  %p195_p4 = pnand %p194_p3, %p188_p0 }
  0x23   :  { %129 = vadd.xlane.f32.xlu0 %v128_v5 }
  0x83   :  { %v27_v8 = vpop.permute.xlu0 %26 }
  0x84   :  { %vm28_vm3 = vcmp.eq.s32.totalorder %v24_v7, %v27_v8 }
  0x85   :  { %v168_v9 = vsel %vm28_vm3, 1.0, %v212_v2 }
  0x86   :  { %176 = vmatmul.mubr.msk.f32.vlgmr.msra.gmra.mrb[0].mxu0 %vm31_vm2, %v168_v9 }
  0xb0   :  { %v130_v10 = vpop.xlane.xlu0 %129 }
  0xb1   :  { %185 = vrsqrt.f32 %v130_v10 }
  0xbb   :  { %v186_v11 = vpop.eup %185 }
  0xbc   :  { %v132_v12 = vmul.f32 %v186_v11, %v21_v3 }
  0xbe   :  { %v133_v13 = vsel %vm109_vm1, %v132_v12, 0.0 }
  0xbf   :  { %v134_v14 = vrot.slane %v133_v13, 4 }
  0xc1   :  { %v135_v15 = vadd.f32 %v134_v14, %v133_v13 }
  0xc3   :  { %v136_v16 = vrot.slane %v135_v15, 2 }
  0xc5   :  { %v137_v17 = vadd.f32 %v136_v16, %v135_v15 }
  0xc7   :  { %v138_v18 = vrot.slane %v137_v17, 1 }
  0xc9   :  { %v139_v20 = vadd.f32 %v138_v18, %v137_v17 }
  0xcb   :  { %v140_v25 = vmul.f32 %v139_v20, %v139_v20 }
  0xcd   :  { %v141_v27 = vsel %vm109_vm1, %v140_v25, 0.0 }
 0x159   :  { %v101_v21 = vpop.f32.mrb[0].mxu0 }
 0x15a   :  { %v106_v22 = vsub.f32 %v105_v19, %v101_v21  ;;  %v177_v23 = vpop.f32.mrb[1].mxu0 }
 0x15c   :  { %v108_v24 = vmul.f32 %v106_v22, %v106_v22 }
 0x15e   :  { %v110_v26 = vsel %vm109_vm1, %v108_v24, 0.0 }
 0x15f   :  { %111 = vadd.xlane.f32.xlu1 %v110_v26 }
 0x163   :  { %142 = vadd.xlane.f32.xlu1 %v141_v27 }
 0x1ec   :  { %v112_v28 = vpop.xlane.xlu1 %111 }
 0x1ed   :  { %v113_v29 = vrot.slane %v112_v28, 4 }
 0x1ef   :  { %v114_v30 = vadd.f32 %v113_v29, %v112_v28 }
 0x1f0   :  { %v143_v38 = vpop.xlane.xlu1 %142 }
 0x1f1   :  { %v115_v31 = vrot.slane %v114_v30, 2  ;;  %v170_v39 = vadd.f32 -8.0, %v143_v38 }
 0x1f3   :  { %v116_v32 = vadd.f32 %v115_v31, %v114_v30  ;;  %v145_v40 = vadd.f32 56.0, %v170_v39 }
 0x1f5   :  { %v117_v33 = vrot.slane %v116_v32, 1  ;;  %v150_v44 = vmul.f32 10.0, %v145_v40 }
 0x1f7   :  { %v118_v34 = vadd.f32 %v117_v33, %v116_v32 }
 0x1f9   :  { %178 = vpush %v118_v34 }
 0x22a   :  { %s179_s1 = spop %178 }
 0x22b   :  { %v120_v36 = vstv %s179_s1 }
 0x22c   :  { %v121_v37 = vadd.f32 %v120_v36, %v107_v35 }
 0x22e   :  { %123 = vst.msk [vmem:[#allocation2] sm:$0x1] %vm19_vm4, %v121_v37 }
 0x235   :  { %v146_v41 = vld [vmem:[#allocation2] sm:$0x1] }
 0x236   :  { %v147_v42 = vmul.f32 0.5, %v146_v41 }
 0x238   :  { %v149_v43 = vmul.f32 0.125, %v147_v42 }
 0x23a   :  { %v151_v45 = vadd.f32 %v150_v44, %v149_v43 }
 0x23c   :  { %v152_v46 = vmul.f32 0.01, %v151_v45 }
 0x23e   :  { %153 = vst.msk [vmem:[#allocation2] sm:$0x1] %vm19_vm4, %v152_v46 }
 0x23f   :  { %198 = shalt.err (!%p195_p4)
}
 0x240   :  { %s199_s22 = scalar_lea.hbm %s266_s3, 16 }
 0x241   :  { %p200_p5 = scmp.ne.s32.totalorder %s266_s3, %s199_s22  ;;  %p203_p6 = scmp.lt.u32.totalorder %s199_s22, %s266_s3 }
 0x243   :  { %p205_p7 = pnand %p203_p6, %p200_p5 }
 0x245   :  { %208 = shalt.err (!%p205_p7)
}
 0x246   :  { %163 = dma.vmem_to_hbm [thread:$0]  %s161_s17, 16, %s266_s3, [#allocation3]  }
 0x247   :  { %209 = dma.done.wait [#allocation3], 16  }
 0x248   :  { %210 = vsyncadd [#allocation3], 4294967280 }
 0x249   :  { %167 = vsyncpa [#allocation3], 1 }

</bundles_post_ra>
